<compile_context>
chip_gen: v5e
topology: v5e:2x2
jax: 0.10.0
libtpu: 0.0.40
codegen_flags: <defaults>
</compile_context>

<pallas_src>
import functools

import jax
import jax.numpy as jnp
from jax import lax
from jax.experimental import pallas as pl
from jax.experimental.pallas import tpu as pltpu

LANE = 128


def _detect_tpu():
    """Best-effort (tensorcores_per_chip, vmem_bytes_per_core).

    Falls back to (1, 128 MiB) -- v5e/v6e-like -- when the query is
    unavailable; that fallback is always safe (single split, 8192-row tiles
    still fit comfortably in any generation's physical VMEM).
    """
    cores, vmem = 1, 128 * 1024 * 1024
    try:
        info = pltpu.get_tpu_info()
        vmem = int(info.vmem_capacity_bytes)
        # v7x-class parts expose 64 MiB VMEM per TensorCore and have 2 TCs per
        # chip; v5e/v6e expose 128 MiB and have a single TC.
        cores = 2 if vmem <= 64 * 1024 * 1024 else 1
    except Exception:
        pass
    return cores, vmem


def _sublane_granularity(dtype):
    """Minimum sublane multiple for a dtype (packed dtypes need more rows)."""
    bits = jnp.dtype(dtype).itemsize * 8
    return max(8, 256 // bits)  # f32->8, bf16->16, int8/bool->32


def _focal_kernel(x_ref, y_ref, out_ref, acc_ref, *,
                  alpha, gamma, tiles_per_split, tile_rows, valid_rows,
                  acc_rows):
    c = pl.program_id(0)   # core-split index
    i = pl.program_id(1)   # tile index within the split

    @pl.when(i == 0)
    def _init():
        acc_ref[...] = jnp.zeros_like(acc_ref)

    x = x_ref[...].astype(jnp.float32)   # probabilities (BCELoss semantics)
    y = y_ref[...]                       # labels in their original dtype
    is_one = y == 1                      # NOTE: assumes strictly binary labels

    a = jnp.where(is_one, alpha, 1.0 - alpha)
    pt = jnp.where(is_one, x, 1.0 - x)
    one_minus_pt = 1.0 - pt

    # nn.BCELoss(reduction='none') with binary labels:
    #   -(y*log(x) + (1-y)*log(1-x)) == -clamp(log(pt), min=-100)
    ce = -jnp.maximum(jnp.log(pt), -100.0)

    # (1 - pt)^gamma, specialised for common integer gammas (avoids exp/log).
    if gamma == 2.0:
        focal = one_minus_pt * one_minus_pt
    elif gamma == 1.0:
        focal = one_minus_pt
    elif gamma == 0.0:
        focal = jnp.ones_like(one_minus_pt)
    else:
        focal = jnp.power(one_minus_pt, jnp.float32(gamma))

    loss = a * focal * ce

    # NOTE: row indices are int32 -- fine for any realistic n (< ~2.7e11 elems).
    logical_tile = c * tiles_per_split + i
    row0 = logical_tile * tile_rows

    def _accum(vals):
        # (tile_rows, 128) -> (tile_rows//acc_rows, acc_rows, 128); summing the
        # leading axis is plain vreg adds into acc_rows//8 independent chains.
        acc_ref[...] += vals.reshape(-1, acc_rows, LANE).sum(axis=0)

    # Hot path: fully interior tiles need no masking work at all.
    @pl.when(row0 + tile_rows <= valid_rows)
    def _full():
        _accum(loss)

    # Cold path: the (possibly ragged) last tile and clamped duplicate tiles of
    # an uneven core split. jnp.where is a select, so log() garbage / NaN in
    # invalid rows does not propagate. Clamped duplicates have
    # row0 >= valid_rows, so they mask to zero entirely -- do NOT change the
    # index_map clamp target without revisiting this invariant.
    @pl.when(row0 + tile_rows > valid_rows)
    def _partial():
        row_ids = row0 + lax.broadcasted_iota(jnp.int32, loss.shape, 0)
        _accum(jnp.where(row_ids < valid_rows, loss, 0.0))

    @pl.when(i == pl.num_programs(1) - 1)
    def _finalize():
        out_ref[...] = acc_ref[...].reshape(-1, 8, LANE).sum(axis=0)


def _focal_prefix_sum(x_flat, y_flat, alpha, gamma, n_elems):
    """Sum of focal loss over a lane-aligned flat prefix (n_elems % 128 == 0)."""
    rows = n_elems // LANE
    # Contiguous reshape -> bitcast, no HBM copy.
    x2 = x_flat.reshape(rows, LANE)
    y2 = y_flat.reshape(rows, LANE)

    cores, vmem_cap = _detect_tpu()

    g = max(_sublane_granularity(x_flat.dtype), _sublane_granularity(y_flat.dtype))

    # Big tiles amortize the ~0.35us per-grid-step overhead; cap lower on
    # 64-MiB-VMEM (v7x-class) chips so double-buffered inputs + elementwise
    # temporaries stay well inside scoped VMEM.
    max_tile_rows = 8192 if vmem_cap >= 100 * 1024 * 1024 else 4096
    tile_rows = min(max_tile_rows, pl.cdiv(rows, g) * g)

    total_tiles = pl.cdiv(rows, tile_rows)
    num_splits = cores if total_tiles >= cores else 1
    tiles_per_split = pl.cdiv(total_tiles, num_splits)

    # Wider accumulator => independent add chains (insurance against a
    # serialized single-vreg vadd chain when tiles are large / compute-bound).
    acc_rows = 64 if tile_rows % 64 == 0 else 8

    def in_index(c, i):
        t = c * tiles_per_split + i
        # Clamp so duplicated (out-of-range) blocks still DMA valid data; they
        # are masked to zero inside the kernel by logical row id.
        return (jnp.minimum(t, total_tiles - 1), 0)

    kernel = functools.partial(
        _focal_kernel, alpha=float(alpha), gamma=float(gamma),
        tiles_per_split=tiles_per_split, tile_rows=tile_rows,
        valid_rows=rows, acc_rows=acc_rows)

    bytes_accessed = (n_elems * (x_flat.dtype.itemsize + y_flat.dtype.itemsize)
                      + num_splits * 8 * LANE * 4)
    cost = pl.CostEstimate(flops=12 * n_elems, transcendentals=n_elems,
                           bytes_accessed=bytes_accessed)

    if num_splits > 1:
        # Real per-TensorCore sharding on 2-TC chips (plain "parallel" would
        # still run the split axis as a serial loop on one core).
        dim_sem = (pltpu.CORE_PARALLEL, pltpu.ARBITRARY)
    else:
        dim_sem = (pltpu.ARBITRARY, pltpu.ARBITRARY)

    vmem_limit = min(int(vmem_cap * 3 // 4), 96 * 1024 * 1024)

    partials = pl.pallas_call(
        kernel,
        out_shape=jax.ShapeDtypeStruct((num_splits * 8, LANE), jnp.float32),
        grid_spec=pltpu.PrefetchScalarGridSpec(
            num_scalar_prefetch=0,
            grid=(num_splits, tiles_per_split),
            in_specs=[
                pl.BlockSpec((tile_rows, LANE), in_index),
                pl.BlockSpec((tile_rows, LANE), in_index),
            ],
            out_specs=pl.BlockSpec((8, LANE), lambda c, i: (c, 0)),
            scratch_shapes=[pltpu.VMEM((acc_rows, LANE), jnp.float32)],
        ),
        compiler_params=pltpu.CompilerParams(
            dimension_semantics=dim_sem,
            vmem_limit_bytes=vmem_limit),
        cost_estimate=cost,
    )(x2, y2)

    # Tiny epilogue: <= (2*8, 128) cross-lane reduce.
    return jnp.sum(partials)


def _focal_elementwise(x, y, alpha, gamma):
    """Pure-JAX focal loss terms (used only for the <128-element tail)."""
    x = x.astype(jnp.float32)
    is_one = y == 1
    a = jnp.where(is_one, alpha, 1.0 - alpha)
    pt = jnp.where(is_one, x, 1.0 - x)
    ce = -jnp.maximum(jnp.log(pt), -100.0)
    return a * jnp.power(1.0 - pt, jnp.float32(gamma)) * ce


def focal_loss_v1(probs, label, alpha=0.25, gamma=2, reduction='mean'):
    """FocalLossV1.forward. `probs` must be probabilities in (0, 1) (BCELoss
    semantics, despite the PyTorch arg name `logits`); `label` must be binary
    {0, 1} in any integer/bool dtype (int8/bool recommended: halves HBM traffic
    of this bandwidth-bound kernel, no wrapper-side cast is performed)."""
    if reduction not in ('mean', 'sum'):
        # TODO(synk): reduction='none' (per-element output) not implemented.
        raise NotImplementedError("only 'mean' and 'sum' reductions supported")

    n = int(probs.size)
    x = probs.reshape(-1)
    y = label.reshape(-1)

    tail = n % LANE
    aligned = n - tail

    total = jnp.float32(0.0)
    if tail:
        # TODO(synk): for lane-misaligned n the prefix slice below may
        # materialize an XLA copy; aligned n (the common case for NCHW inputs)
        # takes the zero-copy path and never reaches this branch.
        total = total + jnp.sum(_focal_elementwise(x[aligned:], y[aligned:],
                                                   float(alpha), float(gamma)))
        x = x[:aligned]
        y = y[:aligned]

    if aligned:
        total = total + _focal_prefix_sum(x, y, alpha, gamma, aligned)

    if reduction == 'mean':
        return total / jnp.float32(n)
    return total


def _reference(probs, label, alpha=0.25, gamma=2, reduction='mean'):
    x = probs.astype(jnp.float32)
    yb = label == 1
    a = jnp.where(yb, alpha, 1.0 - alpha)
    pt = jnp.where(yb, x, 1.0 - x)
    yf = label.astype(jnp.float32)
    ce = -(yf * jnp.maximum(jnp.log(x), -100.0)
           + (1.0 - yf) * jnp.maximum(jnp.log(1.0 - x), -100.0))
    loss = a * jnp.power(1.0 - pt, gamma) * ce
    return jnp.mean(loss) if reduction == 'mean' else jnp.sum(loss)


if __name__ == "__main__":
    key = jax.random.PRNGKey(0)
    k1, k2 = jax.random.split(key)
    # NCHW, small shapes; BCELoss treats inputs as probabilities, keep in (0,1).
    probs = jax.random.uniform(k1, (2, 4, 16, 16), dtype=jnp.float32,
                               minval=0.01, maxval=0.99)
    label = jax.random.bernoulli(k2, 0.3, (2, 4, 16, 16)).astype(jnp.int32)

    loss_mean = jax.block_until_ready(
        focal_loss_v1(probs, label, alpha=0.25, gamma=2, reduction='mean'))
    loss_sum = jax.block_until_ready(
        focal_loss_v1(probs, label, alpha=0.25, gamma=2, reduction='sum'))

    ref_mean = _reference(probs, label, reduction='mean')
    ref_sum = _reference(probs, label, reduction='sum')
    assert jnp.allclose(loss_mean, ref_mean, rtol=1e-5, atol=1e-6), (loss_mean, ref_mean)
    assert jnp.allclose(loss_sum, ref_sum, rtol=1e-5, atol=1e-4), (loss_sum, ref_sum)
    print("KERNEL_OK")
</pallas_src>

<mosaic_0001>
module attributes {stable_mosaic.version = 11 : i64} {
  func.func @_focal_kernel(%arg0: i32, %arg1: i32, %arg2: memref<16x128xf32, #tpu.memory_space<vmem>>, %arg3: memref<16x128xi32, #tpu.memory_space<vmem>>, %arg4: memref<8x128xf32, #tpu.memory_space<vmem>>, %arg5: memref<8x128xf32, #tpu.memory_space<vmem>>) attributes {dimension_semantics = [#tpu.dimension_semantics<arbitrary>, #tpu.dimension_semantics<arbitrary>], iteration_bounds = array<i64: 1, 1>, scalar_prefetch = 0 : i64, scratch_operands = 1 : i64, tpu.core_type = #tpu.core_type<tc>, window_params = [{transform_indices = @transform_0, window_bounds = array<i64: 16, 128>}, {transform_indices = @transform_1, window_bounds = array<i64: 16, 128>}, {transform_indices = @transform_2, window_bounds = array<i64: 8, 128>}]} {
    %c0_i32 = arith.constant 0 : i32
    %0 = arith.cmpi eq, %arg1, %c0_i32 : i32
    %1 = arith.extui %0 : i1 to i32
    %c0_i32_0 = arith.constant 0 : i32
    %2 = arith.cmpi ne, %1, %c0_i32_0 : i32
    scf.if %2 {
      %cst_18 = arith.constant 0.000000e+00 : f32
      %37 = vector.broadcast %cst_18 : f32 to vector<8x128xf32>
      %c0_19 = arith.constant 0 : index
      %c0_20 = arith.constant 0 : index
      %38 = vector.load %arg5[%c0_19, %c0_20] : memref<8x128xf32, #tpu.memory_space<vmem>>, vector<8x128xf32>
      tpu.vector_store %arg5[%c0_19, %c0_20], %37 {strides = array<i32>} : memref<8x128xf32, #tpu.memory_space<vmem>>, vector<8x128xf32>,
    } else {
    }
    %c0 = arith.constant 0 : index
    %c0_1 = arith.constant 0 : index
    %3 = vector.load %arg2[%c0, %c0_1] : memref<16x128xf32, #tpu.memory_space<vmem>>, vector<16x128xf32>
    %c0_2 = arith.constant 0 : index
    %c0_3 = arith.constant 0 : index
    %4 = vector.load %arg3[%c0_2, %c0_3] : memref<16x128xi32, #tpu.memory_space<vmem>>, vector<16x128xi32>
    %c1_i32 = arith.constant 1 : i32
    %5 = vector.broadcast %c1_i32 : i32 to vector<16x128xi32>
    %6 = arith.cmpi eq, %4, %5 : vector<16x128xi32>
    %cst = arith.constant 2.500000e-01 : f32
    %cst_4 = arith.constant 7.500000e-01 : f32
    %7 = vector.broadcast %cst : f32 to vector<16x128xf32>
    %8 = vector.broadcast %cst_4 : f32 to vector<16x128xf32>
    %9 = arith.select %6, %7, %8 : vector<16x128xi1>, vector<16x128xf32>
    %cst_5 = arith.constant 1.000000e+00 : f32
    %10 = vector.broadcast %cst_5 : f32 to vector<16x128xf32>
    %11 = arith.subf %10, %3 : vector<16x128xf32>
    %12 = arith.select %6, %3, %11 : vector<16x128xi1>, vector<16x128xf32>
    %cst_6 = arith.constant 1.000000e+00 : f32
    %13 = vector.broadcast %cst_6 : f32 to vector<16x128xf32>
    %14 = arith.subf %13, %12 : vector<16x128xf32>
    %15 = math.log %12 : vector<16x128xf32>
    %cst_7 = arith.constant -1.000000e+02 : f32
    %16 = vector.broadcast %cst_7 : f32 to vector<16x128xf32>
    %17 = arith.maximumf %15, %16 : vector<16x128xf32>
    %cst_8 = arith.constant 0.000000e+00 : f32
    %18 = vector.broadcast %cst_8 : f32 to vector<16x128xf32>
    %19 = arith.subf %18, %17 : vector<16x128xf32>
    %20 = arith.mulf %14, %14 : vector<16x128xf32>
    %21 = arith.mulf %9, %20 : vector<16x128xf32>
    %22 = arith.mulf %21, %19 : vector<16x128xf32>
    %c1_i32_9 = arith.constant 1 : i32
    %23 = arith.muli %arg0, %c1_i32_9 : i32
    %24 = arith.addi %23, %arg1 : i32
    %c16_i32 = arith.constant 16 : i32
    %25 = arith.muli %24, %c16_i32 : i32
    %c16_i32_10 = arith.constant 16 : i32
    %26 = arith.addi %25, %c16_i32_10 : i32
    %c16_i32_11 = arith.constant 16 : i32
    %27 = arith.cmpi sle, %26, %c16_i32_11 : i32
    %28 = arith.extui %27 : i1 to i32
    %c0_i32_12 = arith.constant 0 : i32
    %29 = arith.cmpi ne, %28, %c0_i32_12 : i32
    scf.if %29 {
      %c0_18 = arith.constant 0 : index
      %c0_19 = arith.constant 0 : index
      %37 = vector.load %arg5[%c0_18, %c0_19] : memref<8x128xf32, #tpu.memory_space<vmem>>, vector<8x128xf32>
      %38 = vector.shape_cast %22 : vector<16x128xf32> to vector<2x8x128xf32>
      %cst_20 = arith.constant dense<0.000000e+00> : vector<8x128xf32>
      %39 = vector.multi_reduction <add>, %38, %cst_20 [0] : vector<2x8x128xf32> to vector<8x128xf32>
      %40 = arith.addf %37, %39 : vector<8x128xf32>
      %c0_21 = arith.constant 0 : index
      %c0_22 = arith.constant 0 : index
      %41 = vector.load %arg5[%c0_21, %c0_22] : memref<8x128xf32, #tpu.memory_space<vmem>>, vector<8x128xf32>
      tpu.vector_store %arg5[%c0_21, %c0_22], %40 {strides = array<i32>} : memref<8x128xf32, #tpu.memory_space<vmem>>, vector<8x128xf32>,
    } else {
    }
    %c16_i32_13 = arith.constant 16 : i32
    %30 = arith.addi %25, %c16_i32_13 : i32
    %c16_i32_14 = arith.constant 16 : i32
    %31 = arith.cmpi sgt, %30, %c16_i32_14 : i32
    %32 = arith.extui %31 : i1 to i32
    %c0_i32_15 = arith.constant 0 : i32
    %33 = arith.cmpi ne, %32, %c0_i32_15 : i32
    scf.if %33 {
      %37 = tpu.iota {dimensions = array<i32: 0>} : vector<16x128xi32>
      %38 = vector.broadcast %25 : i32 to vector<16x128xi32>
      %39 = arith.addi %38, %37 : vector<16x128xi32>
      %c16_i32_18 = arith.constant 16 : i32
      %40 = vector.broadcast %c16_i32_18 : i32 to vector<16x128xi32>
      %41 = arith.cmpi slt, %39, %40 : vector<16x128xi32>
      %cst_19 = arith.constant 0.000000e+00 : f32
      %42 = vector.broadcast %cst_19 : f32 to vector<16x128xf32>
      %43 = arith.select %41, %22, %42 : vector<16x128xi1>, vector<16x128xf32>
      %c0_20 = arith.constant 0 : index
      %c0_21 = arith.constant 0 : index
      %44 = vector.load %arg5[%c0_20, %c0_21] : memref<8x128xf32, #tpu.memory_space<vmem>>, vector<8x128xf32>
      %45 = vector.shape_cast %43 : vector<16x128xf32> to vector<2x8x128xf32>
      %cst_22 = arith.constant dense<0.000000e+00> : vector<8x128xf32>
      %46 = vector.multi_reduction <add>, %45, %cst_22 [0] : vector<2x8x128xf32> to vector<8x128xf32>
      %47 = arith.addf %44, %46 : vector<8x128xf32>
      %c0_23 = arith.constant 0 : index
      %c0_24 = arith.constant 0 : index
      %48 = vector.load %arg5[%c0_23, %c0_24] : memref<8x128xf32, #tpu.memory_space<vmem>>, vector<8x128xf32>
      tpu.vector_store %arg5[%c0_23, %c0_24], %47 {strides = array<i32>} : memref<8x128xf32, #tpu.memory_space<vmem>>, vector<8x128xf32>,
    } else {
    }
    %c0_i32_16 = arith.constant 0 : i32
    %34 = arith.cmpi eq, %arg1, %c0_i32_16 : i32
    %35 = arith.extui %34 : i1 to i32
    %c0_i32_17 = arith.constant 0 : i32
    %36 = arith.cmpi ne, %35, %c0_i32_17 : i32
    scf.if %36 {
      %c0_18 = arith.constant 0 : index
      %c0_19 = arith.constant 0 : index
      %37 = vector.load %arg5[%c0_18, %c0_19] : memref<8x128xf32, #tpu.memory_space<vmem>>, vector<8x128xf32>
      %38 = vector.shape_cast %37 : vector<8x128xf32> to vector<1x8x128xf32>
      %cst_20 = arith.constant dense<0.000000e+00> : vector<8x128xf32>
      %39 = vector.multi_reduction <add>, %38, %cst_20 [0] : vector<1x8x128xf32> to vector<8x128xf32>
      %c0_21 = arith.constant 0 : index
      %c0_22 = arith.constant 0 : index
      %40 = vector.load %arg4[%c0_21, %c0_22] : memref<8x128xf32, #tpu.memory_space<vmem>>, vector<8x128xf32>
      tpu.vector_store %arg4[%c0_21, %c0_22], %39 {strides = array<i32>} : memref<8x128xf32, #tpu.memory_space<vmem>>, vector<8x128xf32>,
    } else {
    }
    return
  }
  func.func @transform_0(%arg0: i32, %arg1: i32) -> (i32, i32) {
    %c1_i32 = arith.constant 1 : i32
    %0 = arith.muli %arg0, %c1_i32 : i32
    %1 = arith.addi %0, %arg1 : i32
    %c0_i32 = arith.constant 0 : i32
    %2 = arith.minsi %1, %c0_i32 : i32
    %c0_i32_0 = arith.constant 0 : i32
    %c0_i32_1 = arith.constant 0 : i32
    return %2, %c0_i32_0 : i32, i32
  }
  func.func @transform_1(%arg0: i32, %arg1: i32) -> (i32, i32) {
    %c1_i32 = arith.constant 1 : i32
    %0 = arith.muli %arg0, %c1_i32 : i32
    %1 = arith.addi %0, %arg1 : i32
    %c0_i32 = arith.constant 0 : i32
    %2 = arith.minsi %1, %c0_i32 : i32
    %c0_i32_0 = arith.constant 0 : i32
    %c0_i32_1 = arith.constant 0 : i32
    return %2, %c0_i32_0 : i32, i32
  }
  func.func @transform_2(%arg0: i32, %arg1: i32) -> (i32, i32) {
    %c0_i32 = arith.constant 0 : i32
    %c0_i32_0 = arith.constant 0 : i32
    return %arg0, %c0_i32 : i32, i32
  }
}

</mosaic_0001>

<bundles_post_ra>
// kernel: tpu_custom_call.1
= control target key start
LH: loop header
LB: loop body
LE: loop exit
PB: predicated region body
PF: predicated region fallthrough
CT: control target
= control target key end

     0   :  { %7 = vsyncpa [#allocation4], 0  ;;  %s272_s0 = inlined_call_operand.hbm [shape: f32[16,128], index: 0, kind: input, shape index: {}]   ;;  %s273_s1 = inlined_call_operand.hbm [shape: s32[16,128], index: 1, kind: input, shape index: {}]   ;;  %s274_s2 = inlined_call_operand.hbm [shape: f32[8,128], index: 2, kind: output, shape index: {}]  }
   0x1   :  { %8 = vsyncpa [#allocation7], 0 }
   0x2   :  { %9 = vsyncpa [#allocation5], 0  ;;  %s20_s11 = sshll.u32 %s272_s0, 4  ;;  %s242_s12 = smov [#allocation3]   ;;  %s21_s11 = int_to_ptr.hbm [resolvable:$true] %s20_s11 }
   0x3   :  { %s22_s13 = sshll.u32 %s242_s12, 4  ;;  %s39_s16 = sshll.u32 %s273_s1, 4  ;;  %s23_s13 = int_to_ptr.vmem [resolvable:$true] %s22_s13  ;;  %s40_s16 = int_to_ptr.hbm [resolvable:$true] %s39_s16 }
   0x4   :  { %s243_s17 = smov 128   ;;  %s244_s18 = smov 8  }
   0x5   :  { %28 = dma.hbm_to_vmem [thread:$0]  %s21_s11, 256, %s23_s13, [#allocation4], %s243_s17, %s243_s17, %s244_s18  }
   0x6   :  { %s245_s19 = smov [#allocation6]  }
   0x7   :  { %s41_s20 = sshll.u32 %s245_s19, 4  ;;  %s42_s20 = int_to_ptr.vmem [resolvable:$true] %s41_s20 }
   0x8   :  { %47 = dma.hbm_to_vmem [thread:$0]  %s40_s16, 256, %s42_s20, [#allocation7], %s243_s17, %s243_s17, %s244_s18  }
   0x9   :  { %236 = dma.done.wait [#allocation4], 256  }
   0xa   :  { %237 = vsyncadd [#allocation4], 4294967040 }
   0xb   :  { %238 = dma.done.wait [#allocation7], 256  }
   0xc   :  { %239 = vsyncadd [#allocation7], 4294967040  ;;  %v69_v0 = vld [vmem:[#allocation3] sm:$0xff]  ;;  %v70_v1 = vld [vmem:[#allocation3 + $0x8] sm:$0xff]  ;;  %v246_v12 = vmov 0.75   ;;  %s247_s0 = smov [#allocation8]  }
   0xd   :  { %v71_v2 = vld [vmem:[#allocation6] sm:$0xff]  ;;  %v72_v3 = vld [vmem:[#allocation6 + $0x8] sm:$0xff]  ;;  %v77_v4 = vsub.f32 1.0, %v69_v0  ;;  %v78_v5 = vsub.f32 1.0, %v70_v1  ;;  %s137_s1 = sshll.u32 %s247_s0, 4  ;;  %s139_s23 = sshll.u32 %s274_s2, 4  ;;  %s138_s1 = int_to_ptr.vmem [resolvable:$true] %s137_s1  ;;  %s140_s23 = int_to_ptr.hbm [resolvable:$true] %s139_s23 }
   0xe   :  { %vm73_vm0 = vcmp.eq.s32.totalorder %v71_v2, 1  ;;  %vm74_vm1 = vcmp.eq.s32.totalorder %v72_v3, 1 }
   0xf   :  { %v79_v6 = vsel %vm73_vm0, %v69_v0, %v77_v4  ;;  %v80_v7 = vsel %vm74_vm1, %v70_v1, %v78_v5  ;;  %v75_v13 = vsel %vm73_vm0, 0.25, %v246_v12  ;;  %v76_v16 = vsel %vm74_vm1, 0.25, %v246_v12 }
  0x10   :  { %160 = vlog2.f32 %v79_v6  ;;  %v81_v8 = vsub.f32 1.0, %v79_v6  ;;  %v82_v9 = vsub.f32 1.0, %v80_v7 }
  0x11   :  { %162 = vlog2.f32 %v80_v7 }
  0x12   :  { %v91_v10 = vmul.f32 %v81_v8, %v81_v8  ;;  %v92_v14 = vmul.f32 %v82_v9, %v82_v9 }
  0x14   :  { %v93_v20 = vmul.f32 %v91_v10, %v75_v13  ;;  %v94_v22 = vmul.f32 %v92_v14, %v76_v16 }
  0x16   :  { %v161_v11 = vpop.eup %160 }
  0x17   :  { %v163_v15 = vpop.eup %162  ;;  %v84_v17 = vmul.f32 0.6931472, %v161_v11 }
  0x18   :  { %v86_v18 = vmul.f32 0.6931472, %v163_v15 }
  0x19   :  { %v87_v19 = vmax.f32 %v84_v17, -100.0 }
  0x1a   :  { %v88_v21 = vmax.f32 %v86_v18, -100.0 }
  0x1b   :  { %v89_v23 = vsub.f32 0.0, %v87_v19 }
  0x1c   :  { %v90_v24 = vsub.f32 0.0, %v88_v21 }
  0x1d   :  { %v95_v25 = vmul.f32 %v93_v20, %v89_v23 }
  0x1e   :  { %v96_v26 = vmul.f32 %v94_v22, %v90_v24 }
  0x20   :  { %v105_v27 = vadd.f32 %v96_v26, %v95_v25 }
  0x22   :  { %131 = vst [vmem:[#allocation8] sm:$0xff] %v105_v27 }
  0x23   :  { %142 = dma.vmem_to_hbm [thread:$0]  %s138_s1, 128, %s140_s23, [#allocation5]  }
  0x24   :  { %240 = dma.done.wait [#allocation5], 128  }
  0x25   :  { %241 = vsyncadd [#allocation5], 4294967168 }
  0x26   :  { %147 = vsyncpa [#allocation4], 1 }
  0x27   :  { %148 = vsyncpa [#allocation7], 1 }
  0x28   :  { %149 = vsyncpa [#allocation5], 1 }

</bundles_post_ra>
